<compile_context>
chip_gen: v5e
topology: v5e:2x2
jax: 0.10.0
libtpu: 0.0.40
codegen_flags: <defaults>
</compile_context>

<pallas_src>
import functools

import jax
import jax.numpy as jnp
from jax.experimental import pallas as pl
from jax.experimental.pallas import tpu as pltpu


def _round_up(x, m):
    return (x + m - 1) // m * m


def actor_mlp_kernel(obs_ref, w1_ref, b1_ref, w2_ref, b2_ref, w3_ref, b3_ref,
                     mu_ref):
    # 3-layer MLP on the current (TB, in_dim) obs tile.
    # Layer 1 in f32 (K=16, cheap; tightens accuracy); layers 2/3 use bf16
    # operands for native MXU rate.  Accumulation / bias / tanh stay in f32.
    x = obs_ref[...]
    h1 = jnp.tanh(
        jnp.dot(x, w1_ref[...], preferred_element_type=jnp.float32)
        + b1_ref[...])
    h2 = jnp.tanh(
        jnp.dot(h1.astype(jnp.bfloat16), w2_ref[...],
                preferred_element_type=jnp.float32)
        + b2_ref[...])
    mu_ref[...] = (
        jnp.dot(h2.astype(jnp.bfloat16), w3_ref[...],
                preferred_element_type=jnp.float32)
        + b3_ref[...])


@functools.partial(jax.jit, static_argnames=("tile_b", "materialize_sigma"))
def actor_forward(obs, params, *, tile_b=4096, materialize_sigma=True):
    """obs: (B, input_dim) f32 -> (mu, sigma).

    mu is (B, output_dim) f32.  sigma is (B, output_dim) when
    materialize_sigma=True (exact PyTorch-module parity), else the
    (1, output_dim) row (sigma does not depend on obs, so large-batch callers
    can avoid the B*out_dim HBM writeback entirely).
    """
    w1, b1, w2, b2, w3, b3, sig = params
    B, in_dim = obs.shape
    hidden = w1.shape[1]
    out_dim = w3.shape[1]

    # Batch tiling: biggest tile <= tile_b, multiple of 8 sublanes.  No
    # padding of obs / slicing of mu -- the grid uses cdiv and Pallas handles
    # the partial last block (wasted work on <= TB-1 garbage rows only).
    TB = max(8, min(tile_b, _round_up(B, 8)))
    num_steps = pl.cdiv(B, TB)
    if num_steps == 1 and B > 8:
        # Ensure >= 2 grid steps so both v7x TensorCores get work via the
        # "parallel" grid axis (negligible cost on 1-TC v5e/v6e).
        TB = max(8, _round_up(pl.cdiv(B, 2), 8))
        num_steps = pl.cdiv(B, TB)
    grid = (num_steps,)

    # bf16 operands for the hidden/output matmuls (MXU-native rate).  These
    # casts are ~12 KB total; kept here for a self-contained params API.
    w2b = w2.astype(jnp.bfloat16)
    w3b = w3.astype(jnp.bfloat16)

    # Weight/bias blocks ignore the grid index -> DMA'd once, VMEM-resident
    # for the whole grid (Pallas skips re-copies when the block index is
    # unchanged between steps).
    resident = lambda shape: pl.BlockSpec(shape, lambda i: (0, 0))

    flops = 2 * B * (in_dim * hidden + hidden * hidden + hidden * out_dim)
    bytes_accessed = (
        B * (in_dim + out_dim) * 4                       # obs in + mu out (f32)
        + 4 * in_dim * hidden                            # f32 W1
        + 2 * (hidden * hidden + hidden * out_dim)       # bf16 W2/W3
        + (2 * hidden + out_dim) * 4)                    # f32 biases
    cost = pl.CostEstimate(flops=flops,
                           transcendentals=B * 2 * hidden,
                           bytes_accessed=bytes_accessed)

    mu = pl.pallas_call(
        actor_mlp_kernel,
        out_shape=jax.ShapeDtypeStruct((B, out_dim), jnp.float32),
        grid=grid,
        in_specs=[
            pl.BlockSpec((TB, in_dim), lambda i: (i, 0)),
            resident(w1.shape), resident(b1.shape),
            resident(w2b.shape), resident(b2.shape),
            resident(w3b.shape), resident(b3.shape),
        ],
        out_specs=pl.BlockSpec((TB, out_dim), lambda i: (i, 0)),
        compiler_params=pltpu.CompilerParams(
            dimension_semantics=("parallel",),
            vmem_limit_bytes=32 * 1024 * 1024),
        cost_estimate=cost,
    )(obs, w1, b1, w2b, b2, w3b, b3)

    # sigma = exp(sigma_param): one exp on a (1, out_dim) row; it does not
    # depend on obs, so nothing sigma-related runs inside the kernel.
    sigma_row = jnp.exp(sig)
    if materialize_sigma:
        return mu, jnp.broadcast_to(sigma_row, mu.shape)
    return mu, sigma_row


def init_actor_params(key, input_dim, output_dim, hidden=64):
    """Deterministic init mimicking nn.Linear default (uniform +-1/sqrt(fan_in))."""
    ks = jax.random.split(key, 6)

    def linear(kw, kb, fan_in, fan_out):
        bound = 1.0 / jnp.sqrt(fan_in)
        w = jax.random.uniform(kw, (fan_in, fan_out), jnp.float32, -bound, bound)
        b = jax.random.uniform(kb, (1, fan_out), jnp.float32, -bound, bound)
        return w, b

    w1, b1 = linear(ks[0], ks[1], input_dim, hidden)
    w2, b2 = linear(ks[2], ks[3], hidden, hidden)
    w3, b3 = linear(ks[4], ks[5], hidden, output_dim)
    # self.sigma = Parameter(zeros(output_dim, 1)) init'd to -0.5, viewed to (1, -1)
    sig = jnp.full((1, output_dim), -0.5, dtype=jnp.float32)
    return (w1, b1, w2, b2, w3, b3, sig)


def actor_reference(obs, params):
    w1, b1, w2, b2, w3, b3, sig = params
    h = jnp.tanh(obs @ w1 + b1)
    h = jnp.tanh(h @ w2 + b2)
    mu = h @ w3 + b3
    sigma = jnp.exp(sig + jnp.zeros_like(mu))
    return mu, sigma


if __name__ == "__main__":
    key = jax.random.PRNGKey(0)
    k_obs, k_par = jax.random.split(key)

    # Batch deliberately not a multiple of the tile so the cdiv-grid partial
    # last block is exercised (no pad / no slice anywhere).
    batch, input_dim, output_dim = 50, 16, 8
    obs = jax.random.normal(k_obs, (batch, input_dim), dtype=jnp.float32)
    params = init_actor_params(k_par, input_dim, output_dim)

    # Small explicit tile: 4 grid steps, last one partial (50 = 3*16 + 2).
    mu, sigma = actor_forward(obs, params, tile_b=16)
    # Default tile: exercises the ">= 2 parallel steps" cap (TB=32, 2 steps,
    # partial tail of 18 rows).
    mu2, sigma2 = actor_forward(obs, params)
    jax.block_until_ready((mu, sigma, mu2, sigma2))

    mu_ref, sigma_ref = actor_reference(obs, params)
    assert mu.shape == (batch, output_dim) and sigma.shape == (batch, output_dim)
    assert mu2.shape == (batch, output_dim) and sigma2.shape == (batch, output_dim)
    # bf16 operands in layers 2/3 (f32 accumulation) -> slightly looser tol.
    assert jnp.allclose(mu, mu_ref, atol=2e-2, rtol=2e-2)
    assert jnp.allclose(mu2, mu_ref, atol=2e-2, rtol=2e-2)
    assert jnp.allclose(sigma, sigma_ref, atol=1e-5, rtol=1e-5)
    assert jnp.allclose(sigma2, sigma_ref, atol=1e-5, rtol=1e-5)

    print("KERNEL_OK")
</pallas_src>

<mosaic_0001>
module attributes {stable_mosaic.version = 11 : i64} {
  func.func @actor_mlp_kernel(%arg0: i32, %arg1: memref<16x16xf32, #tpu.memory_space<vmem>>, %arg2: memref<16x64xf32, #tpu.memory_space<vmem>>, %arg3: memref<1x64xf32, #tpu.memory_space<vmem>>, %arg4: memref<64x64xbf16, #tpu.memory_space<vmem>>, %arg5: memref<1x64xf32, #tpu.memory_space<vmem>>, %arg6: memref<64x8xbf16, #tpu.memory_space<vmem>>, %arg7: memref<1x8xf32, #tpu.memory_space<vmem>>, %arg8: memref<16x8xf32, #tpu.memory_space<vmem>>) attributes {dimension_semantics = [#tpu.dimension_semantics<parallel>], iteration_bounds = array<i64: 4>, scalar_prefetch = 0 : i64, scratch_operands = 0 : i64, tpu.core_type = #tpu.core_type<tc>, window_params = [{transform_indices = @transform_0, window_bounds = array<i64: 16, 16>}, {pipeline_mode = #tpu.pipeline_mode<synchronous>, transform_indices = @transform_1, window_bounds = array<i64: 16, 64>}, {pipeline_mode = #tpu.pipeline_mode<synchronous>, transform_indices = @transform_2, window_bounds = array<i64: 1, 64>}, {pipeline_mode = #tpu.pipeline_mode<synchronous>, transform_indices = @transform_3, window_bounds = array<i64: 64, 64>}, {pipeline_mode = #tpu.pipeline_mode<synchronous>, transform_indices = @transform_4, window_bounds = array<i64: 1, 64>}, {pipeline_mode = #tpu.pipeline_mode<synchronous>, transform_indices = @transform_5, window_bounds = array<i64: 64, 8>}, {pipeline_mode = #tpu.pipeline_mode<synchronous>, transform_indices = @transform_6, window_bounds = array<i64: 1, 8>}, {transform_indices = @transform_7, window_bounds = array<i64: 16, 8>}]} {
    %c0 = arith.constant 0 : index
    %c0_0 = arith.constant 0 : index
    %0 = vector.load %arg1[%c0, %c0_0] : memref<16x16xf32, #tpu.memory_space<vmem>>, vector<16x16xf32>
    %c0_1 = arith.constant 0 : index
    %c0_2 = arith.constant 0 : index
    %1 = vector.load %arg2[%c0_1, %c0_2] : memref<16x64xf32, #tpu.memory_space<vmem>>, vector<16x64xf32>
    %cst = arith.constant dense<0.000000e+00> : vector<16x64xf32>
    %2 = tpu.matmul %0, %1, %cst {dimension_numbers = #tpu.dot_dimension_numbers<[1], [0], [0], [1], [0, 0, 1, 1], [], []>} : vector<16x16xf32>, vector<16x64xf32>, vector<16x64xf32> -> vector<16x64xf32>
    %c0_3 = arith.constant 0 : index
    %c0_4 = arith.constant 0 : index
    %3 = vector.load %arg3[%c0_3, %c0_4] : memref<1x64xf32, #tpu.memory_space<vmem>>, vector<1x64xf32>
    %4 = vector.broadcast %3 : vector<1x64xf32> to vector<16x64xf32>
    %5 = arith.addf %2, %4 : vector<16x64xf32>
    %6 = math.tanh %5 : vector<16x64xf32>
    %7 = arith.truncf %6 : vector<16x64xf32> to vector<16x64xbf16>
    %c0_5 = arith.constant 0 : index
    %c0_6 = arith.constant 0 : index
    %8 = vector.load %arg4[%c0_5, %c0_6] : memref<64x64xbf16, #tpu.memory_space<vmem>>, vector<64x64xbf16>
    %cst_7 = arith.constant dense<0.000000e+00> : vector<16x64xf32>
    %9 = tpu.matmul %7, %8, %cst_7 {dimension_numbers = #tpu.dot_dimension_numbers<[1], [0], [0], [1], [0, 0, 1, 1], [], []>} : vector<16x64xbf16>, vector<64x64xbf16>, vector<16x64xf32> -> vector<16x64xf32>
    %c0_8 = arith.constant 0 : index
    %c0_9 = arith.constant 0 : index
    %10 = vector.load %arg5[%c0_8, %c0_9] : memref<1x64xf32, #tpu.memory_space<vmem>>, vector<1x64xf32>
    %11 = vector.broadcast %10 : vector<1x64xf32> to vector<16x64xf32>
    %12 = arith.addf %9, %11 : vector<16x64xf32>
    %13 = math.tanh %12 : vector<16x64xf32>
    %14 = arith.truncf %13 : vector<16x64xf32> to vector<16x64xbf16>
    %c0_10 = arith.constant 0 : index
    %c0_11 = arith.constant 0 : index
    %15 = vector.load %arg6[%c0_10, %c0_11] : memref<64x8xbf16, #tpu.memory_space<vmem>>, vector<64x8xbf16>
    %cst_12 = arith.constant dense<0.000000e+00> : vector<16x8xf32>
    %16 = tpu.matmul %14, %15, %cst_12 {dimension_numbers = #tpu.dot_dimension_numbers<[1], [0], [0], [1], [0, 0, 1, 1], [], []>} : vector<16x64xbf16>, vector<64x8xbf16>, vector<16x8xf32> -> vector<16x8xf32>
    %c0_13 = arith.constant 0 : index
    %c0_14 = arith.constant 0 : index
    %17 = vector.load %arg7[%c0_13, %c0_14] : memref<1x8xf32, #tpu.memory_space<vmem>>, vector<1x8xf32>
    %18 = vector.broadcast %17 : vector<1x8xf32> to vector<16x8xf32>
    %19 = arith.addf %16, %18 : vector<16x8xf32>
    %c0_15 = arith.constant 0 : index
    %c0_16 = arith.constant 0 : index
    %20 = vector.load %arg8[%c0_15, %c0_16] : memref<16x8xf32, #tpu.memory_space<vmem>>, vector<16x8xf32>
    tpu.vector_store %arg8[%c0_15, %c0_16], %19 {strides = array<i32>} : memref<16x8xf32, #tpu.memory_space<vmem>>, vector<16x8xf32>,
    return
  }
  func.func @transform_0(%arg0: i32) -> (i32, i32) {
    %c0_i32 = arith.constant 0 : i32
    %c0_i32_0 = arith.constant 0 : i32
    return %arg0, %c0_i32 : i32, i32
  }
  func.func @transform_1(%arg0: i32) -> (i32, i32) {
    %c0_i32 = arith.constant 0 : i32
    %c0_i32_0 = arith.constant 0 : i32
    %c0_i32_1 = arith.constant 0 : i32
    return %c0_i32, %c0_i32_0 : i32, i32
  }
  func.func @transform_2(%arg0: i32) -> (i32, i32) {
    %c0_i32 = arith.constant 0 : i32
    %c0_i32_0 = arith.constant 0 : i32
    %c0_i32_1 = arith.constant 0 : i32
    return %c0_i32, %c0_i32_0 : i32, i32
  }
  func.func @transform_3(%arg0: i32) -> (i32, i32) {
    %c0_i32 = arith.constant 0 : i32
    %c0_i32_0 = arith.constant 0 : i32
    %c0_i32_1 = arith.constant 0 : i32
    return %c0_i32, %c0_i32_0 : i32, i32
  }
  func.func @transform_4(%arg0: i32) -> (i32, i32) {
    %c0_i32 = arith.constant 0 : i32
    %c0_i32_0 = arith.constant 0 : i32
    %c0_i32_1 = arith.constant 0 : i32
    return %c0_i32, %c0_i32_0 : i32, i32
  }
  func.func @transform_5(%arg0: i32) -> (i32, i32) {
    %c0_i32 = arith.constant 0 : i32
    %c0_i32_0 = arith.constant 0 : i32
    %c0_i32_1 = arith.constant 0 : i32
    return %c0_i32, %c0_i32_0 : i32, i32
  }
  func.func @transform_6(%arg0: i32) -> (i32, i32) {
    %c0_i32 = arith.constant 0 : i32
    %c0_i32_0 = arith.constant 0 : i32
    %c0_i32_1 = arith.constant 0 : i32
    return %c0_i32, %c0_i32_0 : i32, i32
  }
  func.func @transform_7(%arg0: i32) -> (i32, i32) {
    %c0_i32 = arith.constant 0 : i32
    %c0_i32_0 = arith.constant 0 : i32
    return %arg0, %c0_i32 : i32, i32
  }
}

</mosaic_0001>

<bundles_post_ra>
// kernel: actor_forward.1
= control target key start
LH: loop header
LB: loop body
LE: loop exit
PB: predicated region body
PF: predicated region fallthrough
CT: control target
= control target key end

     0   :  { %s973_s24 = smov 0   ;;  %s975_s25 = smov 0   ;;  %s1097_s0 = inlined_call_operand.vmem [shape: f32[50,16], index: 0, kind: input, shape index: {}]   ;;  %s1098_s1 = inlined_call_operand.vmem [shape: f32[16,64], index: 1, kind: input, shape index: {}]   ;;  %s1099_s2 = inlined_call_operand.vmem [shape: f32[1,64], index: 2, kind: input, shape index: {}]   ;;  %s1100_s3 = inlined_call_operand.vmem [shape: bf16[64,64], index: 3, kind: input, shape index: {}]   ;;  %s1101_s4 = inlined_call_operand.vmem [shape: f32[1,64], index: 4, kind: input, shape index: {}]   ;;  %s1102_s5 = inlined_call_operand.vmem [shape: bf16[64,8], index: 5, kind: input, shape index: {}]   ;;  %s1103_s6 = inlined_call_operand.vmem [shape: f32[1,8], index: 6, kind: input, shape index: {}]   ;;  %s1104_s7 = inlined_call_operand.vmem [shape: f32[50,8], index: 7, kind: output, shape index: {}]  }
   0x1   :  { %s977_s26 = smov 0  }
   0x2 LB: > { %s986_s27 = sadd.s32 4294967295, %s899_s26   ;;  %s988_s28 = sadd.s32 1, %s899_s26   ;;  %s899_s26 = sphi %s977_s26, %s1108_s26   ;;  %s895_s25 = sphi %s975_s25, %s1107_s25   ;;  %s891_s24 = sphi %s973_s24, %s1106_s24  }
   0x3   : > { %s173_s29 = ssub.s32 %s899_s26, %s988_s28  ;;  %s176_s30 = sadd.s32 1, %s895_s25 }
   0x4   : > { %p174_p0 = scmp.eq.s32.totalorder %s173_s29, 0  ;;  %p186_p1 = scmp.ne.s32.totalorder %s895_s25, %s891_s24 }
   0x5   : > { %p187_p2 = scmp.eq.s32.totalorder %s986_s27, 3  ;;  %p678_p3 = scmp.ge.s32.totalorder %s899_s26, 1 }
   0x6   : > { %s996_s8 = scalar_select %p174_p0, %s895_s25, %s176_s30  }
   0x7   : > { %p998_p4 = por %p187_p2, %p186_p1  ;;  %p246_p5 = scmp.lt.s32.totalorder %s899_s26, 5 }
   0x9   : > { %p247_p6 = pnand %p678_p3, %p246_p5 }
   0xa   : > { %s1009_s14 = sshll.u32 (!%p247_p6), %s986_s27, 1  ;;  %s278_s26 = sand.u32 (!%p247_p6), 1, %s891_s24  }
   0xb   : > { %250 = sbr.rel (%p247_p6) target bundleno = 493 (0x1ed), region = 48  ;;  %p286_p7 = scmp.lt.s32.totalorder (!%p247_p6), %s1009_s14, 6 }
   0xc   : > { %s679_s29 = sshll.u32 (!%p247_p6), %s278_s26, 4 }
   0xd   : > { %s1052_s11 = scalar_lea.vmem (!%p247_p6), [#allocation2], %s679_s29  }
  0x10   : > { %v304_v0 = vld [vmem:[%s1098_s1 + $0x8] sm:$0xff]  ;;  %v303_v1 = vld [vmem:[%s1098_s1] sm:$0xff]  ;;  %s287_s15 = scalar_select %p286_p7, %s1009_s14, 6  ;;  %vm309_vm0 = vcmask 130048   ;;  %v738_v4 = vld [vmem:[%s1100_s3 + $0x18] sm:$0xff]  ;;  %vm378_vm1 = vcmask 523264  }
  0x11   : > { %330 = vmatpush.msra.mxu0 %v304_v0  ;;  %386 = vmatpush.bf16.msra.mxu1 %v738_v4  ;;  %v737_v5 = vld [vmem:[%s1100_s3 + $0x10] sm:$0xff]  ;;  %v736_v6 = vld [vmem:[%s1100_s3 + $0x8] sm:$0xff]  ;;  %v735_v7 = vld [vmem:[%s1100_s3] sm:$0xff]  ;;  %vm452_vm2 = vcmask 64512   ;;  %s463_s24 = ssub.s32 (%p998_p4), 7, %s1009_s14  ;;  %s743_s12 = sshll.u32 (%p998_p4), %s986_s27, 4 }
  0x12   : > { %s681_s16 = sshll.u32 %s287_s15, 3  ;;  %v834_v9 = vld [vmem:[%s1099_s2] ss:$0 sm:$0xff]  ;;  %v742_v16 = vld [vmem:[%s1102_s5 + $0x18] sm:$0xff]  ;;  %v741_v17 = vld [vmem:[%s1102_s5 + $0x10] sm:$0xff]  ;;  %p464_p8 = scmp.lt.s32.totalorder (%p998_p4), %s463_s24, 2 }
  0x13   : > { %331 = vmatpush.msra.mxu0 %v303_v1  ;;  %s289_s19 = scalar_lea.vmem %s1097_s0, %s681_s16  ;;  %442 = vmatpush.bf16.msra.mxu2 %v742_v16  ;;  %v740_v18 = vld [vmem:[%s1102_s5 + $0x8] sm:$0xff]  ;;  %v739_v19 = vld [vmem:[%s1102_s5] sm:$0xff]  ;;  %s1063_s16 = scalar_lea.vmem (%p998_p4), %s1104_s7, %s743_s12  }
  0x14   : > { %v301_v2 = vld [vmem:[%s289_s19] sm:$0xff]  ;;  %v302_v3 = vld [vmem:[%s289_s19 + $0x8] sm:$0xff] }
  0x15   : > { %682 = vmatmul.msk.f32.vlgmr.msra.gmra.mxu0 %vm309_vm0, %v301_v2  ;;  %387 = vmatpush.bf16.msra.mxu1 %v737_v5  ;;  %v835_v21 = vld [vmem:[%s1101_s4] ss:$0 sm:$0xff] }
  0x16   : > { %v836_v28 = vld [vmem:[%s1103_s6] ss:$0 sm:$0xff] }
  0x17   : > { %443 = vmatpush.bf16.msra.mxu2 %v741_v17 }
  0x19   : > { %388 = vmatpush.bf16.msra.mxu1 %v736_v6 }
  0x1b   : > { %444 = vmatpush.bf16.msra.mxu2 %v740_v18 }
  0x1d   : > { %683 = vmatmul.msk.f32.gmra.mxu0 %vm309_vm0, %v302_v3  ;;  %389 = vmatpush.bf16.msra.mxu1 %v735_v7 }
  0x1f   : > { %445 = vmatpush.bf16.msra.mxu2 %v739_v19 }
  0x92   : > { %v333_v8 = vpop.f32.mrf.mxu0 }
  0x93   : > { %v334_v10 = vadd.f32 %v834_v9, %v333_v8 }
  0x95   : > { %837 = vtanh.f32 %v334_v10 }
  0x9a   : > { %v336_v11 = vpop.f32.mrf.mxu0 }
  0x9b   : > { %v337_v12 = vadd.f32 %v834_v9, %v336_v11  ;;  %v838_v13 = vpop.eup %837 }
  0x9d   : > { %839 = vtanh.f32 %v337_v12 }
  0xa3   : > { %v840_v14 = vpop.eup %839 }
  0xa4   : > { %v341_v15 = vpack.c.bf16 %v840_v14, %v838_v13 }
  0xa6   : > { %700 = vmatmul.msk.bf16.vlgmr.msra.gmra.mxu1 %vm378_vm1, %v341_v15 }
 0x123   : > { %v391_v20 = vpop.f32.mrf.mxu1 }
 0x124   : > { %v392_v22 = vadd.f32 %v835_v21, %v391_v20 }
 0x126   : > { %841 = vtanh.f32 %v392_v22 }
 0x12b   : > { %v393_v23 = vpop.f32.mrf.mxu1 }
 0x12c   : > { %v394_v24 = vadd.f32 %v835_v21, %v393_v23  ;;  %v842_v25 = vpop.eup %841 }
 0x12e   : > { %843 = vtanh.f32 %v394_v24 }
 0x134   : > { %v844_v26 = vpop.eup %843 }
 0x135   : > { %v398_v27 = vpack.c.bf16 %v844_v26, %v842_v25 }
 0x137   : > { %717 = vmatmul.msk.bf16.vlgmr.msra.gmra.mxu2 %vm378_vm1, %v398_v27 }
 0x1ba   : > { %v447_v29 = vpop.f32.mrf.mxu2 }
 0x1bb   : > { %v448_v30 = vadd.f32 %v836_v28, %v447_v29 }
 0x1bd   : > { %453 = vst.msk [vmem:[%s1052_s11] sm:$0xff] %vm452_vm2, %v448_v30 }
 0x1c1   : > { %461 = sbr.rel (!%p998_p4) target bundleno = 493 (0x1ed), region = 52 }
 0x1c2   : > { %v449_v31 = vpop.f32.mrf.mxu2 }
 0x1c3   : > { %v450_v32 = vadd.f32 %v836_v28, %v449_v31 }
 0x1c5   : > { %454 = vst.msk [vmem:[%s1052_s11 + $0x8] sm:$0xff] %vm452_vm2, %v450_v32 }
 0x1c6   : > { %s1110_s24 = smov (!%p464_p8, %s463_s24), 2 }
 0x1c7   : > { %s720_s17 = sshll.u32 %s1110_s24, 3 }
 0x1c8   : > { %p723_p9 = scmp.eq.s32.totalorder %s720_s17, 0 }
 0x1c9   : > { %s1069_s18 = sshrl.u32 (!%p723_p9), %s1110_s24, 1 }
 0x1ca   : > { %472 = sbr.rel (%p723_p9) target bundleno = 493 (0x1ed), region = 56  ;;  %p724_p10 = scmp.le.s32.totalorder (!%p723_p9), %s1069_s18, 0 }
 0x1cf   : > { %631 = sbr.rel (%p724_p10) target bundleno = 476 (0x1dc), region = 132  ;;  %s901_s27 = smov (!%p724_p10), %s1063_s16  }
 0x1d0   : > { %s905_s9 = smov (!%p724_p10), %s1052_s11   ;;  %s909_s14 = smov (!%p724_p10), 0  }
 0x1d1   : > { %s913_s19 = smov (!%p724_p10), 0  }
 0x1d4 LB: >> { %v537_v33 = vld [vmem:[%s907_s9] sm:$0xff]  ;;  %v539_v34 = vld [vmem:[%s907_s9 + $0x8] sm:$0xff]  ;;  %s541_s20 = sadd.s32 1, %s911_s14  ;;  %s531_s19 = sadd.s32 1, %s915_s19   ;;  %s915_s19 = sphi %s913_s19, %s531_s19   ;;  %s911_s14 = sphi %s909_s14, %s910_s14   ;;  %s907_s9 = sphi %s905_s9, %s546_s9   ;;  %s903_s27 = sphi %s901_s27, %s547_s27  }
 0x1d5   : >> { %538 = vst [vmem:[%s903_s27] sm:$0xff] %v537_v33  ;;  %p542_p11 = scmp.ge.s32.totalorder %s541_s20, %s1069_s18  ;;  %p530_p12 = scmp.ge.s32.totalorder %s531_s19, %s1069_s18 }
 0x1d6   : >> { %540 = vst [vmem:[%s903_s27 + $0x8] sm:$0xff] %v539_v34 }
 0x1d7   : >> { %s1112_s20 = smov (%p542_p11, %s541_s20), 0  ;;  %533 = sbr.rel (!%p530_p12) target bundleno = 468 (0x1d4), region = 138 }
 0x1d8   : >> { %s725_s21 = sshll.u32 %s1112_s20, 4  ;;  %s910_s14 = smov %s1112_s20  }
 0x1d9   : >> { %s546_s9 = scalar_lea.vmem %s1052_s11, %s725_s21 [#allocation2]   ;;  %s547_s27 = scalar_lea.vmem %s1063_s16, %s725_s21  }
 0x1dc PF: > { %s1079_s22 = sand.u32 1, %s1110_s24   ;;  %s744_s23 = sshll.u32 %s1069_s18, 4 }
 0x1dd   : > { %s552_s26 = scalar_lea.vmem %s1052_s11, %s744_s23 [#allocation2]   ;;  %s554_s29 = scalar_lea.vmem %s1063_s16, %s744_s23  }
 0x1de   : > { %p730_p13 = scmp.le.s32.totalorder %s1079_s22, 0 }
 0x1df   : > { %s917_s30 = smov (!%p730_p13), %s554_s29   ;;  %s921_s10 = smov (!%p730_p13), %s552_s26  }
 0x1e0   : > { %645 = sbr.rel (%p730_p13) target bundleno = 493 (0x1ed), region = 143  ;;  %s925_s12 = smov (!%p730_p13), 0  }
 0x1e1   : > { %s929_s13 = smov (!%p730_p13), 0  }
 0x1e5 LB: >> { %v564_v35 = vld [vmem:[%s923_s10] sm:$0xff]  ;;  %s566_s24 = sadd.s32 1, %s927_s12  ;;  %s558_s13 = sadd.s32 1, %s931_s13   ;;  %s931_s13 = sphi %s929_s13, %s558_s13   ;;  %s927_s12 = sphi %s925_s12, %s926_s12   ;;  %s923_s10 = sphi %s921_s10, %s571_s10   ;;  %s919_s30 = sphi %s917_s30, %s572_s30  }
 0x1e6   : >> { %565 = vst [vmem:[%s919_s30] sm:$0xff] %v564_v35  ;;  %p567_p0 = scmp.ge.s32.totalorder %s566_s24, %s1079_s22  ;;  %p557_p1 = scmp.ge.s32.totalorder %s558_s13, %s1079_s22 }
 0x1e8   : >> { %s1114_s24 = smov (%p567_p0, %s566_s24), 0  ;;  %560 = sbr.rel (!%p557_p1) target bundleno = 485 (0x1e5), region = 149 }
 0x1e9   : >> { %s731_s11 = sshll.u32 %s1114_s24, 3  ;;  %s926_s12 = smov %s1114_s24  }
 0x1ea   : >> { %s571_s10 = scalar_lea.vmem %s552_s26, %s731_s11 [#allocation2]   ;;  %s572_s30 = scalar_lea.vmem %s554_s29, %s731_s11  }
 0x1ed PF: > { %p14_p2 = scmp.ge.s32.totalorder %s988_s28, 6   ;;  %s1106_s24 = smov %s895_s25 }
 0x1ee   : > { %s1107_s25 = smov %s996_s8  ;;  %s1108_s26 = smov %s988_s28 }
 0x1ef   :  { %16 = sbr.rel (!%p14_p2) target bundleno = 2 (0x2), region = 160 }

</bundles_post_ra>
